<compile_context>
chip_gen: v6e
topology: v6e:2x2x1
jax: 0.10.0
libtpu: 0.0.40
codegen_flags: <defaults>
</compile_context>

<pallas_src>
import functools

import jax
import jax.numpy as jnp
from jax.experimental import pallas as pl
from jax.experimental.pallas import tpu as pltpu


# Fixed BaseConvNet architecture hyper-parameters.
C0, C1, C2 = 3, 16, 32      # in / conv1-out / conv2-out channels
K1, S1 = 8, 4               # conv1 kernel / stride
K2, S2 = 4, 2               # conv2 kernel / stride


def _basenet_kernel(p1_ref, w1_ref, b1_ref, w2_ref, b2_ref, o_ref,
                    h1_ref, p2_ref, *, W1, H2, W2):
    """One image per grid step.

    p1_ref : (1, H1*W1, K1*K1*C0)  bf16   pre-im2col'd conv1 patches
    w1_ref : (K1*K1*C0, C1)        bf16
    b1_ref : (1, C1)               f32
    w2_ref : (K2*K2*C1, C2)        bf16
    b2_ref : (1, C2)               f32
    o_ref  : (1, H2*W2, C2)        f32
    h1_ref : (H1*W1, C1)           f32    VMEM scratch (conv1 output, never to HBM)
    p2_ref : (H2*W2, K2*K2*C1)     f32    VMEM scratch (conv2 im2col patches)
    """
    # ---------------- conv1: single MXU matmul, contraction = 192 -------------
    h1 = jnp.dot(p1_ref[0], w1_ref[...], preferred_element_type=jnp.float32)
    h1_ref[...] = h1 + b1_ref[...]          # (H1*W1, C1), stays 2-D in VMEM

    # -------- conv2 im2col: static strided row-slab copies, no reshapes -------
    # p2[h2*W2 + w2, (kh*K2+kw)*C1 + c1] = h1[(S2*h2+kh)*W1 + S2*w2 + kw, c1]
    for kh in range(K2):
        for kw in range(K2):
            tap = kh * K2 + kw
            for h2 in range(H2):
                src_row = (S2 * h2 + kh) * W1 + kw
                p2_ref[pl.ds(h2 * W2, W2), pl.ds(tap * C1, C1)] = (
                    h1_ref[pl.ds(src_row, W2, S2), :])

    # ---------------- conv2: single MXU matmul, contraction = 256 -------------
    y = jnp.dot(p2_ref[...].astype(jnp.bfloat16), w2_ref[...],
                preferred_element_type=jnp.float32)
    o_ref[0] = y + b2_ref[...]


def pack_params(w1, b1, w2, b2):
    """Repack torch-layout conv weights ONCE at init (hoisted out of the
    per-step forward): (Cout, Cin, KH, KW) -> (KH*KW*Cin, Cout), bf16."""
    w1p = jnp.transpose(w1, (2, 3, 1, 0)).reshape(K1 * K1 * C0, C1).astype(jnp.bfloat16)
    w2p = jnp.transpose(w2, (2, 3, 1, 0)).reshape(K2 * K2 * C1, C2).astype(jnp.bfloat16)
    b1p = b1.reshape(1, C1).astype(jnp.float32)
    b2p = b2.reshape(1, C2).astype(jnp.float32)
    return w1p, b1p, w2p, b2p


@jax.jit
def base_conv_net(x, w1p, b1p, w2p, b2p):
    """x: (B, 3, H, W) f32 NCHW. Returns (B, 32, H2, W2) f32 NCHW (like PyTorch)."""
    B, _, H0, W0 = x.shape
    H1 = (H0 - K1) // S1 + 1
    W1 = (W0 - K1) // S1 + 1
    H2 = (H1 - K2) // S2 + 1
    W2 = (W1 - K2) // S2 + 1
    M1, M2 = H1 * W1, H2 * W2
    KK1, KK2 = K1 * K1 * C0, K2 * K2 * C1

    # conv1 im2col on the XLA side (cheap strided gather of a small input),
    # giving the kernel a lane-dense (B, H1*W1, 192) bf16 patch matrix.
    # Column order (kh, kw, c0) matches the weight packing above.
    x_nhwc = jnp.transpose(x, (0, 2, 3, 1))
    taps = []
    for kh in range(K1):
        for kw in range(K1):
            taps.append(x_nhwc[:, kh:kh + S1 * H1:S1, kw:kw + S1 * W1:S1, :])
    p1 = jnp.concatenate(taps, axis=-1).reshape(B, M1, KK1).astype(jnp.bfloat16)

    kernel = functools.partial(_basenet_kernel, W1=W1, H2=H2, W2=W2)

    out = pl.pallas_call(
        kernel,
        out_shape=jax.ShapeDtypeStruct((B, M2, C2), jnp.float32),
        grid=(B,),
        in_specs=[
            pl.BlockSpec((1, M1, KK1), lambda b: (b, 0, 0)),   # per-image patches
            pl.BlockSpec((KK1, C1), lambda b: (0, 0)),         # conv1 weights
            pl.BlockSpec((1, C1), lambda b: (0, 0)),           # conv1 bias
            pl.BlockSpec((KK2, C2), lambda b: (0, 0)),         # conv2 weights
            pl.BlockSpec((1, C2), lambda b: (0, 0)),           # conv2 bias
        ],
        out_specs=pl.BlockSpec((1, M2, C2), lambda b: (b, 0, 0)),
        scratch_shapes=[
            pltpu.VMEM((M1, C1), jnp.float32),    # h1 (conv1 output)
            pltpu.VMEM((M2, KK2), jnp.float32),   # conv2 im2col patches
        ],
        compiler_params=pltpu.CompilerParams(
            dimension_semantics=("parallel",)),   # shard batch across TCs (v7x)
    )(p1, w1p, b1p, w2p, b2p)

    # (B, H2*W2, C2) -> NCHW to match the PyTorch module's output layout.
    return out.reshape(B, H2, W2, C2).transpose(0, 3, 1, 2)


if __name__ == "__main__":
    key = jax.random.PRNGKey(0)
    k_x, k_w1, k_b1, k_w2, k_b2 = jax.random.split(key, 5)

    B, H, W = 2, 32, 32                      # -> conv1: 7x7, conv2: 2x2
    x = jax.random.normal(k_x, (B, C0, H, W), dtype=jnp.float32)

    # nn.Conv2d default init: U(-1/sqrt(fan_in), 1/sqrt(fan_in)).
    bound1 = 1.0 / (C0 * K1 * K1) ** 0.5
    w1 = jax.random.uniform(k_w1, (C1, C0, K1, K1), minval=-bound1, maxval=bound1,
                            dtype=jnp.float32)
    b1 = jax.random.uniform(k_b1, (C1,), minval=-bound1, maxval=bound1,
                            dtype=jnp.float32)
    bound2 = 1.0 / (C1 * K2 * K2) ** 0.5
    w2 = jax.random.uniform(k_w2, (C2, C1, K2, K2), minval=-bound2, maxval=bound2,
                            dtype=jnp.float32)
    b2 = jax.random.uniform(k_b2, (C2,), minval=-bound2, maxval=bound2,
                            dtype=jnp.float32)

    params = pack_params(w1, b1, w2, b2)      # packed once, reused every step
    out = base_conv_net(x, *params)
    jax.block_until_ready(out)

    assert out.shape == (B, C2, 2, 2), out.shape

    # Cross-check against XLA's convolution (tolerance admits bf16 MXU passes,
    # which both paths use at these settings).
    ref = jax.lax.conv_general_dilated(
        x, w1, window_strides=(S1, S1), padding="VALID",
        dimension_numbers=("NCHW", "OIHW", "NCHW")) + b1.reshape(1, -1, 1, 1)
    ref = jax.lax.conv_general_dilated(
        ref, w2, window_strides=(S2, S2), padding="VALID",
        dimension_numbers=("NCHW", "OIHW", "NCHW")) + b2.reshape(1, -1, 1, 1)
    assert jnp.allclose(out, ref, atol=5e-2, rtol=5e-2), \
        float(jnp.max(jnp.abs(out - ref)))

    print("KERNEL_OK")
</pallas_src>

<mosaic_0001>
module attributes {stable_mosaic.version = 11 : i64} {
  func.func @_basenet_kernel(%arg0: i32, %arg1: memref<1x49x192xbf16, #tpu.memory_space<vmem>>, %arg2: memref<192x16xbf16, #tpu.memory_space<vmem>>, %arg3: memref<1x16xf32, #tpu.memory_space<vmem>>, %arg4: memref<256x32xbf16, #tpu.memory_space<vmem>>, %arg5: memref<1x32xf32, #tpu.memory_space<vmem>>, %arg6: memref<1x4x32xf32, #tpu.memory_space<vmem>>, %arg7: memref<49x16xf32, #tpu.memory_space<vmem>>, %arg8: memref<4x256xf32, #tpu.memory_space<vmem>>) attributes {dimension_semantics = [#tpu.dimension_semantics<parallel>], iteration_bounds = array<i64: 2>, scalar_prefetch = 0 : i64, scratch_operands = 2 : i64, tpu.core_type = #tpu.core_type<tc>, window_params = [{transform_indices = @transform_0, window_bounds = array<i64: 1, 49, 192>}, {pipeline_mode = #tpu.pipeline_mode<synchronous>, transform_indices = @transform_1, window_bounds = array<i64: 192, 16>}, {pipeline_mode = #tpu.pipeline_mode<synchronous>, transform_indices = @transform_2, window_bounds = array<i64: 1, 16>}, {pipeline_mode = #tpu.pipeline_mode<synchronous>, transform_indices = @transform_3, window_bounds = array<i64: 256, 32>}, {pipeline_mode = #tpu.pipeline_mode<synchronous>, transform_indices = @transform_4, window_bounds = array<i64: 1, 32>}, {transform_indices = @transform_5, window_bounds = array<i64: 1, 4, 32>}]} {
    %c0 = arith.constant 0 : index
    %c0_0 = arith.constant 0 : index
    %c0_1 = arith.constant 0 : index
    %0 = vector.load %arg1[%c0, %c0_0, %c0_1] : memref<1x49x192xbf16, #tpu.memory_space<vmem>>, vector<1x49x192xbf16>
    %1 = vector.shape_cast %0 : vector<1x49x192xbf16> to vector<49x192xbf16>
    %c0_2 = arith.constant 0 : index
    %c0_3 = arith.constant 0 : index
    %2 = vector.load %arg2[%c0_2, %c0_3] : memref<192x16xbf16, #tpu.memory_space<vmem>>, vector<192x16xbf16>
    %cst = arith.constant dense<0.000000e+00> : vector<49x16xf32>
    %3 = tpu.matmul %1, %2, %cst {dimension_numbers = #tpu.dot_dimension_numbers<[1], [0], [0], [1], [0, 0, 1, 1], [], []>} : vector<49x192xbf16>, vector<192x16xbf16>, vector<49x16xf32> -> vector<49x16xf32>
    %c0_4 = arith.constant 0 : index
    %c0_5 = arith.constant 0 : index
    %4 = vector.load %arg3[%c0_4, %c0_5] : memref<1x16xf32, #tpu.memory_space<vmem>>, vector<1x16xf32>
    %5 = vector.broadcast %4 : vector<1x16xf32> to vector<49x16xf32>
    %6 = arith.addf %3, %5 : vector<49x16xf32>
    %c0_6 = arith.constant 0 : index
    %c0_7 = arith.constant 0 : index
    %7 = vector.load %arg7[%c0_6, %c0_7] : memref<49x16xf32, #tpu.memory_space<vmem>>, vector<49x16xf32>
    tpu.vector_store %arg7[%c0_6, %c0_7], %6 {strides = array<i32>} : memref<49x16xf32, #tpu.memory_space<vmem>>, vector<49x16xf32>,
    %c0_8 = arith.constant 0 : index
    %c0_9 = arith.constant 0 : index
    %8 = tpu.strided_load %arg7[%c0_8, %c0_9] {strides = array<i32: 2, 1>} : memref<49x16xf32, #tpu.memory_space<vmem>>, vector<2x16xf32>
    %c0_10 = arith.constant 0 : index
    %c0_11 = arith.constant 0 : index
    %9 = vector.load %arg8[%c0_10, %c0_11] : memref<4x256xf32, #tpu.memory_space<vmem>>, vector<2x16xf32>
    tpu.vector_store %arg8[%c0_10, %c0_11], %8 {strides = array<i32>} : memref<4x256xf32, #tpu.memory_space<vmem>>, vector<2x16xf32>,
    %c14 = arith.constant 14 : index
    %c0_12 = arith.constant 0 : index
    %10 = tpu.strided_load %arg7[%c14, %c0_12] {strides = array<i32: 2, 1>} : memref<49x16xf32, #tpu.memory_space<vmem>>, vector<2x16xf32>
    %c2 = arith.constant 2 : index
    %c0_13 = arith.constant 0 : index
    %11 = vector.load %arg8[%c2, %c0_13] : memref<4x256xf32, #tpu.memory_space<vmem>>, vector<2x16xf32>
    tpu.vector_store %arg8[%c2, %c0_13], %10 {strides = array<i32>} : memref<4x256xf32, #tpu.memory_space<vmem>>, vector<2x16xf32>,
    %c1 = arith.constant 1 : index
    %c0_14 = arith.constant 0 : index
    %12 = tpu.strided_load %arg7[%c1, %c0_14] {strides = array<i32: 2, 1>} : memref<49x16xf32, #tpu.memory_space<vmem>>, vector<2x16xf32>
    %c0_15 = arith.constant 0 : index
    %c16 = arith.constant 16 : index
    %13 = vector.load %arg8[%c0_15, %c16] : memref<4x256xf32, #tpu.memory_space<vmem>>, vector<2x16xf32>
    tpu.vector_store %arg8[%c0_15, %c16], %12 {strides = array<i32>} : memref<4x256xf32, #tpu.memory_space<vmem>>, vector<2x16xf32>,
    %c15 = arith.constant 15 : index
    %c0_16 = arith.constant 0 : index
    %14 = tpu.strided_load %arg7[%c15, %c0_16] {strides = array<i32: 2, 1>} : memref<49x16xf32, #tpu.memory_space<vmem>>, vector<2x16xf32>
    %c2_17 = arith.constant 2 : index
    %c16_18 = arith.constant 16 : index
    %15 = vector.load %arg8[%c2_17, %c16_18] : memref<4x256xf32, #tpu.memory_space<vmem>>, vector<2x16xf32>
    tpu.vector_store %arg8[%c2_17, %c16_18], %14 {strides = array<i32>} : memref<4x256xf32, #tpu.memory_space<vmem>>, vector<2x16xf32>,
    %c2_19 = arith.constant 2 : index
    %c0_20 = arith.constant 0 : index
    %16 = tpu.strided_load %arg7[%c2_19, %c0_20] {strides = array<i32: 2, 1>} : memref<49x16xf32, #tpu.memory_space<vmem>>, vector<2x16xf32>
    %c0_21 = arith.constant 0 : index
    %c32 = arith.constant 32 : index
    %17 = vector.load %arg8[%c0_21, %c32] : memref<4x256xf32, #tpu.memory_space<vmem>>, vector<2x16xf32>
    tpu.vector_store %arg8[%c0_21, %c32], %16 {strides = array<i32>} : memref<4x256xf32, #tpu.memory_space<vmem>>, vector<2x16xf32>,
    %c16_22 = arith.constant 16 : index
    %c0_23 = arith.constant 0 : index
    %18 = tpu.strided_load %arg7[%c16_22, %c0_23] {strides = array<i32: 2, 1>} : memref<49x16xf32, #tpu.memory_space<vmem>>, vector<2x16xf32>
    %c2_24 = arith.constant 2 : index
    %c32_25 = arith.constant 32 : index
    %19 = vector.load %arg8[%c2_24, %c32_25] : memref<4x256xf32, #tpu.memory_space<vmem>>, vector<2x16xf32>
    tpu.vector_store %arg8[%c2_24, %c32_25], %18 {strides = array<i32>} : memref<4x256xf32, #tpu.memory_space<vmem>>, vector<2x16xf32>,
    %c3 = arith.constant 3 : index
    %c0_26 = arith.constant 0 : index
    %20 = tpu.strided_load %arg7[%c3, %c0_26] {strides = array<i32: 2, 1>} : memref<49x16xf32, #tpu.memory_space<vmem>>, vector<2x16xf32>
    %c0_27 = arith.constant 0 : index
    %c48 = arith.constant 48 : index
    %21 = vector.load %arg8[%c0_27, %c48] : memref<4x256xf32, #tpu.memory_space<vmem>>, vector<2x16xf32>
    tpu.vector_store %arg8[%c0_27, %c48], %20 {strides = array<i32>} : memref<4x256xf32, #tpu.memory_space<vmem>>, vector<2x16xf32>,
    %c17 = arith.constant 17 : index
    %c0_28 = arith.constant 0 : index
    %22 = tpu.strided_load %arg7[%c17, %c0_28] {strides = array<i32: 2, 1>} : memref<49x16xf32, #tpu.memory_space<vmem>>, vector<2x16xf32>
    %c2_29 = arith.constant 2 : index
    %c48_30 = arith.constant 48 : index
    %23 = vector.load %arg8[%c2_29, %c48_30] : memref<4x256xf32, #tpu.memory_space<vmem>>, vector<2x16xf32>
    tpu.vector_store %arg8[%c2_29, %c48_30], %22 {strides = array<i32>} : memref<4x256xf32, #tpu.memory_space<vmem>>, vector<2x16xf32>,
    %c7 = arith.constant 7 : index
    %c0_31 = arith.constant 0 : index
    %24 = tpu.strided_load %arg7[%c7, %c0_31] {strides = array<i32: 2, 1>} : memref<49x16xf32, #tpu.memory_space<vmem>>, vector<2x16xf32>
    %c0_32 = arith.constant 0 : index
    %c64 = arith.constant 64 : index
    %25 = vector.load %arg8[%c0_32, %c64] : memref<4x256xf32, #tpu.memory_space<vmem>>, vector<2x16xf32>
    tpu.vector_store %arg8[%c0_32, %c64], %24 {strides = array<i32>} : memref<4x256xf32, #tpu.memory_space<vmem>>, vector<2x16xf32>,
    %c21 = arith.constant 21 : index
    %c0_33 = arith.constant 0 : index
    %26 = tpu.strided_load %arg7[%c21, %c0_33] {strides = array<i32: 2, 1>} : memref<49x16xf32, #tpu.memory_space<vmem>>, vector<2x16xf32>
    %c2_34 = arith.constant 2 : index
    %c64_35 = arith.constant 64 : index
    %27 = vector.load %arg8[%c2_34, %c64_35] : memref<4x256xf32, #tpu.memory_space<vmem>>, vector<2x16xf32>
    tpu.vector_store %arg8[%c2_34, %c64_35], %26 {strides = array<i32>} : memref<4x256xf32, #tpu.memory_space<vmem>>, vector<2x16xf32>,
    %c8 = arith.constant 8 : index
    %c0_36 = arith.constant 0 : index
    %28 = tpu.strided_load %arg7[%c8, %c0_36] {strides = array<i32: 2, 1>} : memref<49x16xf32, #tpu.memory_space<vmem>>, vector<2x16xf32>
    %c0_37 = arith.constant 0 : index
    %c80 = arith.constant 80 : index
    %29 = vector.load %arg8[%c0_37, %c80] : memref<4x256xf32, #tpu.memory_space<vmem>>, vector<2x16xf32>
    tpu.vector_store %arg8[%c0_37, %c80], %28 {strides = array<i32>} : memref<4x256xf32, #tpu.memory_space<vmem>>, vector<2x16xf32>,
    %c22 = arith.constant 22 : index
    %c0_38 = arith.constant 0 : index
    %30 = tpu.strided_load %arg7[%c22, %c0_38] {strides = array<i32: 2, 1>} : memref<49x16xf32, #tpu.memory_space<vmem>>, vector<2x16xf32>
    %c2_39 = arith.constant 2 : index
    %c80_40 = arith.constant 80 : index
    %31 = vector.load %arg8[%c2_39, %c80_40] : memref<4x256xf32, #tpu.memory_space<vmem>>, vector<2x16xf32>
    tpu.vector_store %arg8[%c2_39, %c80_40], %30 {strides = array<i32>} : memref<4x256xf32, #tpu.memory_space<vmem>>, vector<2x16xf32>,
    %c9 = arith.constant 9 : index
    %c0_41 = arith.constant 0 : index
    %32 = tpu.strided_load %arg7[%c9, %c0_41] {strides = array<i32: 2, 1>} : memref<49x16xf32, #tpu.memory_space<vmem>>, vector<2x16xf32>
    %c0_42 = arith.constant 0 : index
    %c96 = arith.constant 96 : index
    %33 = vector.load %arg8[%c0_42, %c96] : memref<4x256xf32, #tpu.memory_space<vmem>>, vector<2x16xf32>
    tpu.vector_store %arg8[%c0_42, %c96], %32 {strides = array<i32>} : memref<4x256xf32, #tpu.memory_space<vmem>>, vector<2x16xf32>,
    %c23 = arith.constant 23 : index
    %c0_43 = arith.constant 0 : index
    %34 = tpu.strided_load %arg7[%c23, %c0_43] {strides = array<i32: 2, 1>} : memref<49x16xf32, #tpu.memory_space<vmem>>, vector<2x16xf32>
    %c2_44 = arith.constant 2 : index
    %c96_45 = arith.constant 96 : index
    %35 = vector.load %arg8[%c2_44, %c96_45] : memref<4x256xf32, #tpu.memory_space<vmem>>, vector<2x16xf32>
    tpu.vector_store %arg8[%c2_44, %c96_45], %34 {strides = array<i32>} : memref<4x256xf32, #tpu.memory_space<vmem>>, vector<2x16xf32>,
    %c10 = arith.constant 10 : index
    %c0_46 = arith.constant 0 : index
    %36 = tpu.strided_load %arg7[%c10, %c0_46] {strides = array<i32: 2, 1>} : memref<49x16xf32, #tpu.memory_space<vmem>>, vector<2x16xf32>
    %c0_47 = arith.constant 0 : index
    %c112 = arith.constant 112 : index
    %37 = vector.load %arg8[%c0_47, %c112] : memref<4x256xf32, #tpu.memory_space<vmem>>, vector<2x16xf32>
    tpu.vector_store %arg8[%c0_47, %c112], %36 {strides = array<i32>} : memref<4x256xf32, #tpu.memory_space<vmem>>, vector<2x16xf32>,
    %c24 = arith.constant 24 : index
    %c0_48 = arith.constant 0 : index
    %38 = tpu.strided_load %arg7[%c24, %c0_48] {strides = array<i32: 2, 1>} : memref<49x16xf32, #tpu.memory_space<vmem>>, vector<2x16xf32>
    %c2_49 = arith.constant 2 : index
    %c112_50 = arith.constant 112 : index
    %39 = vector.load %arg8[%c2_49, %c112_50] : memref<4x256xf32, #tpu.memory_space<vmem>>, vector<2x16xf32>
    tpu.vector_store %arg8[%c2_49, %c112_50], %38 {strides = array<i32>} : memref<4x256xf32, #tpu.memory_space<vmem>>, vector<2x16xf32>,
    %c14_51 = arith.constant 14 : index
    %c0_52 = arith.constant 0 : index
    %40 = tpu.strided_load %arg7[%c14_51, %c0_52] {strides = array<i32: 2, 1>} : memref<49x16xf32, #tpu.memory_space<vmem>>, vector<2x16xf32>
    %c0_53 = arith.constant 0 : index
    %c128 = arith.constant 128 : index
    %41 = vector.load %arg8[%c0_53, %c128] : memref<4x256xf32, #tpu.memory_space<vmem>>, vector<2x16xf32>
    tpu.vector_store %arg8[%c0_53, %c128], %40 {strides = array<i32>} : memref<4x256xf32, #tpu.memory_space<vmem>>, vector<2x16xf32>,
    %c28 = arith.constant 28 : index
    %c0_54 = arith.constant 0 : index
    %42 = tpu.strided_load %arg7[%c28, %c0_54] {strides = array<i32: 2, 1>} : memref<49x16xf32, #tpu.memory_space<vmem>>, vector<2x16xf32>
    %c2_55 = arith.constant 2 : index
    %c128_56 = arith.constant 128 : index
    %43 = vector.load %arg8[%c2_55, %c128_56] : memref<4x256xf32, #tpu.memory_space<vmem>>, vector<2x16xf32>
    tpu.vector_store %arg8[%c2_55, %c128_56], %42 {strides = array<i32>} : memref<4x256xf32, #tpu.memory_space<vmem>>, vector<2x16xf32>,
    %c15_57 = arith.constant 15 : index
    %c0_58 = arith.constant 0 : index
    %44 = tpu.strided_load %arg7[%c15_57, %c0_58] {strides = array<i32: 2, 1>} : memref<49x16xf32, #tpu.memory_space<vmem>>, vector<2x16xf32>
    %c0_59 = arith.constant 0 : index
    %c144 = arith.constant 144 : index
    %45 = vector.load %arg8[%c0_59, %c144] : memref<4x256xf32, #tpu.memory_space<vmem>>, vector<2x16xf32>
    tpu.vector_store %arg8[%c0_59, %c144], %44 {strides = array<i32>} : memref<4x256xf32, #tpu.memory_space<vmem>>, vector<2x16xf32>,
    %c29 = arith.constant 29 : index
    %c0_60 = arith.constant 0 : index
    %46 = tpu.strided_load %arg7[%c29, %c0_60] {strides = array<i32: 2, 1>} : memref<49x16xf32, #tpu.memory_space<vmem>>, vector<2x16xf32>
    %c2_61 = arith.constant 2 : index
    %c144_62 = arith.constant 144 : index
    %47 = vector.load %arg8[%c2_61, %c144_62] : memref<4x256xf32, #tpu.memory_space<vmem>>, vector<2x16xf32>
    tpu.vector_store %arg8[%c2_61, %c144_62], %46 {strides = array<i32>} : memref<4x256xf32, #tpu.memory_space<vmem>>, vector<2x16xf32>,
    %c16_63 = arith.constant 16 : index
    %c0_64 = arith.constant 0 : index
    %48 = tpu.strided_load %arg7[%c16_63, %c0_64] {strides = array<i32: 2, 1>} : memref<49x16xf32, #tpu.memory_space<vmem>>, vector<2x16xf32>
    %c0_65 = arith.constant 0 : index
    %c160 = arith.constant 160 : index
    %49 = vector.load %arg8[%c0_65, %c160] : memref<4x256xf32, #tpu.memory_space<vmem>>, vector<2x16xf32>
    tpu.vector_store %arg8[%c0_65, %c160], %48 {strides = array<i32>} : memref<4x256xf32, #tpu.memory_space<vmem>>, vector<2x16xf32>,
    %c30 = arith.constant 30 : index
    %c0_66 = arith.constant 0 : index
    %50 = tpu.strided_load %arg7[%c30, %c0_66] {strides = array<i32: 2, 1>} : memref<49x16xf32, #tpu.memory_space<vmem>>, vector<2x16xf32>
    %c2_67 = arith.constant 2 : index
    %c160_68 = arith.constant 160 : index
    %51 = vector.load %arg8[%c2_67, %c160_68] : memref<4x256xf32, #tpu.memory_space<vmem>>, vector<2x16xf32>
    tpu.vector_store %arg8[%c2_67, %c160_68], %50 {strides = array<i32>} : memref<4x256xf32, #tpu.memory_space<vmem>>, vector<2x16xf32>,
    %c17_69 = arith.constant 17 : index
    %c0_70 = arith.constant 0 : index
    %52 = tpu.strided_load %arg7[%c17_69, %c0_70] {strides = array<i32: 2, 1>} : memref<49x16xf32, #tpu.memory_space<vmem>>, vector<2x16xf32>
    %c0_71 = arith.constant 0 : index
    %c176 = arith.constant 176 : index
    %53 = vector.load %arg8[%c0_71, %c176] : memref<4x256xf32, #tpu.memory_space<vmem>>, vector<2x16xf32>
    tpu.vector_store %arg8[%c0_71, %c176], %52 {strides = array<i32>} : memref<4x256xf32, #tpu.memory_space<vmem>>, vector<2x16xf32>,
    %c31 = arith.constant 31 : index
    %c0_72 = arith.constant 0 : index
    %54 = tpu.strided_load %arg7[%c31, %c0_72] {strides = array<i32: 2, 1>} : memref<49x16xf32, #tpu.memory_space<vmem>>, vector<2x16xf32>
    %c2_73 = arith.constant 2 : index
    %c176_74 = arith.constant 176 : index
    %55 = vector.load %arg8[%c2_73, %c176_74] : memref<4x256xf32, #tpu.memory_space<vmem>>, vector<2x16xf32>
    tpu.vector_store %arg8[%c2_73, %c176_74], %54 {strides = array<i32>} : memref<4x256xf32, #tpu.memory_space<vmem>>, vector<2x16xf32>,
    %c21_75 = arith.constant 21 : index
    %c0_76 = arith.constant 0 : index
    %56 = tpu.strided_load %arg7[%c21_75, %c0_76] {strides = array<i32: 2, 1>} : memref<49x16xf32, #tpu.memory_space<vmem>>, vector<2x16xf32>
    %c0_77 = arith.constant 0 : index
    %c192 = arith.constant 192 : index
    %57 = vector.load %arg8[%c0_77, %c192] : memref<4x256xf32, #tpu.memory_space<vmem>>, vector<2x16xf32>
    tpu.vector_store %arg8[%c0_77, %c192], %56 {strides = array<i32>} : memref<4x256xf32, #tpu.memory_space<vmem>>, vector<2x16xf32>,
    %c35 = arith.constant 35 : index
    %c0_78 = arith.constant 0 : index
    %58 = tpu.strided_load %arg7[%c35, %c0_78] {strides = array<i32: 2, 1>} : memref<49x16xf32, #tpu.memory_space<vmem>>, vector<2x16xf32>
    %c2_79 = arith.constant 2 : index
    %c192_80 = arith.constant 192 : index
    %59 = vector.load %arg8[%c2_79, %c192_80] : memref<4x256xf32, #tpu.memory_space<vmem>>, vector<2x16xf32>
    tpu.vector_store %arg8[%c2_79, %c192_80], %58 {strides = array<i32>} : memref<4x256xf32, #tpu.memory_space<vmem>>, vector<2x16xf32>,
    %c22_81 = arith.constant 22 : index
    %c0_82 = arith.constant 0 : index
    %60 = tpu.strided_load %arg7[%c22_81, %c0_82] {strides = array<i32: 2, 1>} : memref<49x16xf32, #tpu.memory_space<vmem>>, vector<2x16xf32>
    %c0_83 = arith.constant 0 : index
    %c208 = arith.constant 208 : index
    %61 = vector.load %arg8[%c0_83, %c208] : memref<4x256xf32, #tpu.memory_space<vmem>>, vector<2x16xf32>
    tpu.vector_store %arg8[%c0_83, %c208], %60 {strides = array<i32>} : memref<4x256xf32, #tpu.memory_space<vmem>>, vector<2x16xf32>,
    %c36 = arith.constant 36 : index
    %c0_84 = arith.constant 0 : index
    %62 = tpu.strided_load %arg7[%c36, %c0_84] {strides = array<i32: 2, 1>} : memref<49x16xf32, #tpu.memory_space<vmem>>, vector<2x16xf32>
    %c2_85 = arith.constant 2 : index
    %c208_86 = arith.constant 208 : index
    %63 = vector.load %arg8[%c2_85, %c208_86] : memref<4x256xf32, #tpu.memory_space<vmem>>, vector<2x16xf32>
    tpu.vector_store %arg8[%c2_85, %c208_86], %62 {strides = array<i32>} : memref<4x256xf32, #tpu.memory_space<vmem>>, vector<2x16xf32>,
    %c23_87 = arith.constant 23 : index
    %c0_88 = arith.constant 0 : index
    %64 = tpu.strided_load %arg7[%c23_87, %c0_88] {strides = array<i32: 2, 1>} : memref<49x16xf32, #tpu.memory_space<vmem>>, vector<2x16xf32>
    %c0_89 = arith.constant 0 : index
    %c224 = arith.constant 224 : index
    %65 = vector.load %arg8[%c0_89, %c224] : memref<4x256xf32, #tpu.memory_space<vmem>>, vector<2x16xf32>
    tpu.vector_store %arg8[%c0_89, %c224], %64 {strides = array<i32>} : memref<4x256xf32, #tpu.memory_space<vmem>>, vector<2x16xf32>,
    %c37 = arith.constant 37 : index
    %c0_90 = arith.constant 0 : index
    %66 = tpu.strided_load %arg7[%c37, %c0_90] {strides = array<i32: 2, 1>} : memref<49x16xf32, #tpu.memory_space<vmem>>, vector<2x16xf32>
    %c2_91 = arith.constant 2 : index
    %c224_92 = arith.constant 224 : index
    %67 = vector.load %arg8[%c2_91, %c224_92] : memref<4x256xf32, #tpu.memory_space<vmem>>, vector<2x16xf32>
    tpu.vector_store %arg8[%c2_91, %c224_92], %66 {strides = array<i32>} : memref<4x256xf32, #tpu.memory_space<vmem>>, vector<2x16xf32>,
    %c24_93 = arith.constant 24 : index
    %c0_94 = arith.constant 0 : index
    %68 = tpu.strided_load %arg7[%c24_93, %c0_94] {strides = array<i32: 2, 1>} : memref<49x16xf32, #tpu.memory_space<vmem>>, vector<2x16xf32>
    %c0_95 = arith.constant 0 : index
    %c240 = arith.constant 240 : index
    %69 = vector.load %arg8[%c0_95, %c240] : memref<4x256xf32, #tpu.memory_space<vmem>>, vector<2x16xf32>
    tpu.vector_store %arg8[%c0_95, %c240], %68 {strides = array<i32>} : memref<4x256xf32, #tpu.memory_space<vmem>>, vector<2x16xf32>,
    %c38 = arith.constant 38 : index
    %c0_96 = arith.constant 0 : index
    %70 = tpu.strided_load %arg7[%c38, %c0_96] {strides = array<i32: 2, 1>} : memref<49x16xf32, #tpu.memory_space<vmem>>, vector<2x16xf32>
    %c2_97 = arith.constant 2 : index
    %c240_98 = arith.constant 240 : index
    %71 = vector.load %arg8[%c2_97, %c240_98] : memref<4x256xf32, #tpu.memory_space<vmem>>, vector<2x16xf32>
    tpu.vector_store %arg8[%c2_97, %c240_98], %70 {strides = array<i32>} : memref<4x256xf32, #tpu.memory_space<vmem>>, vector<2x16xf32>,
    %c0_99 = arith.constant 0 : index
    %c0_100 = arith.constant 0 : index
    %72 = vector.load %arg8[%c0_99, %c0_100] : memref<4x256xf32, #tpu.memory_space<vmem>>, vector<4x256xf32>
    %73 = arith.truncf %72 : vector<4x256xf32> to vector<4x256xbf16>
    %c0_101 = arith.constant 0 : index
    %c0_102 = arith.constant 0 : index
    %74 = vector.load %arg4[%c0_101, %c0_102] : memref<256x32xbf16, #tpu.memory_space<vmem>>, vector<256x32xbf16>
    %cst_103 = arith.constant dense<0.000000e+00> : vector<4x32xf32>
    %75 = tpu.matmul %73, %74, %cst_103 {dimension_numbers = #tpu.dot_dimension_numbers<[1], [0], [0], [1], [0, 0, 1, 1], [], []>} : vector<4x256xbf16>, vector<256x32xbf16>, vector<4x32xf32> -> vector<4x32xf32>
    %c0_104 = arith.constant 0 : index
    %c0_105 = arith.constant 0 : index
    %76 = vector.load %arg5[%c0_104, %c0_105] : memref<1x32xf32, #tpu.memory_space<vmem>>, vector<1x32xf32>
    %77 = vector.broadcast %76 : vector<1x32xf32> to vector<4x32xf32>
    %78 = arith.addf %75, %77 : vector<4x32xf32>
    %c0_106 = arith.constant 0 : index
    %c0_107 = arith.constant 0 : index
    %c0_108 = arith.constant 0 : index
    %79 = vector.load %arg6[%c0_106, %c0_107, %c0_108] : memref<1x4x32xf32, #tpu.memory_space<vmem>>, vector<1x4x32xf32>
    %80 = vector.shape_cast %79 : vector<1x4x32xf32> to vector<4x32xf32>
    %81 = vector.shape_cast %78 : vector<4x32xf32> to vector<1x4x32xf32>
    tpu.vector_store %arg6[%c0_106, %c0_107, %c0_108], %81 {strides = array<i32>} : memref<1x4x32xf32, #tpu.memory_space<vmem>>, vector<1x4x32xf32>,
    return
  }
  func.func @transform_0(%arg0: i32) -> (i32, i32, i32) {
    %c0_i32 = arith.constant 0 : i32
    %c0_i32_0 = arith.constant 0 : i32
    %c0_i32_1 = arith.constant 0 : i32
    return %arg0, %c0_i32, %c0_i32_0 : i32, i32, i32
  }
  func.func @transform_1(%arg0: i32) -> (i32, i32) {
    %c0_i32 = arith.constant 0 : i32
    %c0_i32_0 = arith.constant 0 : i32
    %c0_i32_1 = arith.constant 0 : i32
    return %c0_i32, %c0_i32_0 : i32, i32
  }
  func.func @transform_2(%arg0: i32) -> (i32, i32) {
    %c0_i32 = arith.constant 0 : i32
    %c0_i32_0 = arith.constant 0 : i32
    %c0_i32_1 = arith.constant 0 : i32
    return %c0_i32, %c0_i32_0 : i32, i32
  }
  func.func @transform_3(%arg0: i32) -> (i32, i32) {
    %c0_i32 = arith.constant 0 : i32
    %c0_i32_0 = arith.constant 0 : i32
    %c0_i32_1 = arith.constant 0 : i32
    return %c0_i32, %c0_i32_0 : i32, i32
  }
  func.func @transform_4(%arg0: i32) -> (i32, i32) {
    %c0_i32 = arith.constant 0 : i32
    %c0_i32_0 = arith.constant 0 : i32
    %c0_i32_1 = arith.constant 0 : i32
    return %c0_i32, %c0_i32_0 : i32, i32
  }
  func.func @transform_5(%arg0: i32) -> (i32, i32, i32) {
    %c0_i32 = arith.constant 0 : i32
    %c0_i32_0 = arith.constant 0 : i32
    %c0_i32_1 = arith.constant 0 : i32
    return %arg0, %c0_i32, %c0_i32_0 : i32, i32, i32
  }
}

</mosaic_0001>

<bundles_post_ra>
// kernel: base_conv_net.1
= control target key start
LH: loop header
LB: loop body
LE: loop exit
PB: predicated region body
PF: predicated region fallthrough
CT: control target
= control target key end

     0   :  { %10 = vsyncpa [#allocation5], 0  ;;  %s1461_s0 = inlined_call_operand.vmem [shape: bf16[2,49,192], index: 0, kind: input, shape index: {}]   ;;  %s1462_s1 = inlined_call_operand.vmem [shape: bf16[192,16], index: 1, kind: input, shape index: {}]   ;;  %s1463_s2 = inlined_call_operand.vmem [shape: f32[1,16], index: 2, kind: input, shape index: {}]   ;;  %s1464_s3 = inlined_call_operand.vmem [shape: bf16[256,32], index: 3, kind: input, shape index: {}]   ;;  %s1465_s4 = inlined_call_operand.vmem [shape: f32[1,32], index: 4, kind: input, shape index: {}]   ;;  %s1466_s5 = inlined_call_operand.hbm [shape: f32[2,4,32], index: 5, kind: output, shape index: {}]  }
   0x1   :  { %12 = vsyncpa [#allocation5 + $0x1], 0  ;;  %s1207_s18 = smov 0   ;;  %s1209_s19 = smov 0  }
   0x2   :  { %s1211_s20 = smov 0   ;;  %s1213_s21 = smov 0  }
   0x3 LB: > { %s1228_s22 = sadd.s32 4294967295, %s1166_s21   ;;  %s944_s23 = sadd.s32 4294967294, %s1166_s21   ;;  %s1166_s21 = sphi %s1213_s21, %s1472_s21   ;;  %s1162_s20 = sphi %s1211_s20, %s1471_s20   ;;  %s1158_s19 = sphi %s1209_s19, %s1470_s19   ;;  %s1154_s18 = sphi %s1207_s18, %s1469_s18  }
   0x4   : > { %s1232_s24 = sadd.s32 1, %s1166_s21   ;;  %s135_s25 = sadd.s32 1, %s1162_s20 }
   0x5   : > { %s132_s26 = ssub.s32 %s1166_s21, %s1232_s24  ;;  %p145_p0 = scmp.ne.s32.totalorder %s1162_s20, %s1158_s19 }
   0x6   : > { %p133_p1 = scmp.eq.s32.totalorder %s132_s26, 0  ;;  %p146_p2 = scmp.eq.s32.totalorder %s1228_s22, 1 }
   0x7   : > { %p151_p3 = scmp.ne.s32.totalorder %s1158_s19, %s1154_s18  ;;  %p152_p4 = scmp.eq.s32.totalorder %s944_s23, 1 }
   0x8   : > { %s1243_s27 = scalar_select %p133_p1, %s1162_s20, %s135_s25  }
   0x9   : > { %p1245_p5 = por %p146_p2, %p145_p0  ;;  %p1249_p6 = por %p152_p4, %p151_p3 }
   0xa   : > { %p947_p7 = scmp.ge.s32.totalorder %s1166_s21, 1  ;;  %p190_p8 = scmp.lt.s32.totalorder %s1166_s21, 3 }
   0xc   : > { %p191_p9 = pnand %p947_p7, %p190_p8 }
   0xd   : > { %p218_p10 = scmp.lt.s32.totalorder (!%p191_p9), %s1228_s22, 1  ;;  %s1169_s30 = smov (!%p191_p9), 16  }
   0xe   : > { %194 = sbr.rel (%p191_p9) target bundleno = 671 (0x29f), region = 40  ;;  %s1170_s6 = smov (!%p191_p9), 32  }
   0xf   : > { %s1171_s7 = smov (!%p191_p9), 48   ;;  %s1172_s8 = smov (!%p191_p9), 64  }
  0x10   : > { %s1174_s10 = smov (!%p191_p9), 96   ;;  %s1175_s11 = smov (!%p191_p9), 112  }
  0x13   : > { %v1066_v0 = vld [vmem:[%s1462_s1 + $0x38] sm:$0xff]   ;;  %v1168_v1 = vmov 0   ;;  %v1067_v2 = vld [vmem:[%s1462_s1 + $0x30] sm:$0xff]   ;;  %s219_s9 = scalar_select %p218_p10, %s1228_s22, 1  ;;  %v1068_v3 = vld [vmem:[%s1462_s1 + $0x28] sm:$0xff]   ;;  %vm367_vm0 = vcmask 523264  }
  0x14   : > { %380 = vmatprep.subr.bf16.mxu0 %v1168_v1  ;;  %v1069_v4 = vld [vmem:[%s1462_s1 + $0x20] sm:$0xff]   ;;  %v1070_v6 = vld [vmem:[%s1462_s1 + $0x18] sm:$0xff]   ;;  %v1071_v7 = vld [vmem:[%s1462_s1 + $0x10] sm:$0xff]   ;;  %vm444_vm1 = vcmask 130048   ;;  %vm454_vm2 = vcmask 123904   ;;  %vm461_vm3 = vcmask 125954  }
  0x15   : > { %381 = vmatpush1.bf16.msra.mxu0 %v1066_v0  ;;  %s1018_s12 = smul.u32 56, %s219_s9  ;;  %v1072_v8 = vld [vmem:[%s1462_s1 + $0x8] sm:$0xff]   ;;  %v1073_v9 = vld [vmem:[%s1462_s1] sm:$0xff]   ;;  %v1074_v10 = vld [vmem:[%s1462_s1 + $0x58] sm:$0xff]   ;;  %s1173_s9 = smov 80   ;;  %vm469_vm4 = vcmask 255104  }
  0x16   : > { %382 = vmatprep.subr.bf16.mxu0 %v1168_v1  ;;  %v1075_v11 = vld [vmem:[%s1462_s1 + $0x50] sm:$0xff]   ;;  %v1076_v12 = vld [vmem:[%s1462_s1 + $0x48] sm:$0xff]   ;;  %v1077_v13 = vld [vmem:[%s1462_s1 + $0x40] sm:$0xff]   ;;  %vm486_vm5 = vcmask 386304   ;;  %vm503_vm6 = vcmask 517504   ;;  %vm520_vm7 = vcmask 648704  }
  0x17   : > { %s1272_s17 = scalar_lea.vmem %s1461_s0, %s1018_s12  ;;  %v950_v19 = vld [vmem:[%s1463_s2] ss:$0 sm:$0xff]  ;;  %v1087_v0 = vld [vmem:[%s1464_s3 + $0x78] sm:$0xff]   ;;  %vm537_vm8 = vcmask 779904   ;;  %vm554_vm9 = vcmask 911104   ;;  %vm478_vm10 = vcmask 257154  }
  0x18   : > { %v1080_v5 = vld [vmem:[%s1272_s17 + $0x4] ss:$8 sps:$4 sm:$0xff]   ;;  %v1078_v14 = vld [vmem:[%s1272_s17] ss:$8 sps:$4 sm:$0xff]   ;;  %v1081_v15 = vld [vmem:[%s1272_s17 + $0x14] ss:$8 sps:$4 sm:$0xff]   ;;  %996 = vmatprep.subr.bf16.mxu1 %v1087_v0 }
  0x19   : > { %383 = vmatpush1.bf16.msra.mxu0 %v1067_v2  ;;  %971 = vmatprep.mubr.msk.bf16.mxu0 %vm367_vm0, %v1080_v5  ;;  %v1083_v16 = vld [vmem:[%s1272_s17 + $0x10] ss:$8 sps:$4 sm:$0xff]   ;;  %v1084_v17 = vld [vmem:[%s1272_s17 + $0x24] ss:$8 sps:$4 sm:$0xff]   ;;  %v1086_v18 = vld [vmem:[%s1272_s17 + $0x20] ss:$8 sps:$4 sm:$0xff]  }
  0x1a   : > { %384 = vmatprep.subr.bf16.mxu0 %v1168_v1  ;;  %v1089_v5 = vld [vmem:[%s1464_s3 + $0x70] sm:$0xff]   ;;  %vm571_vm11 = vcmask 1042304   ;;  %vm495_vm12 = vcmask 388354   ;;  %vm512_vm13 = vcmask 519554   ;;  %vm529_vm14 = vcmask 650754  }
  0x1b   : > { %vm546_vm15 = vcmask 781954  }
  0x1d   : > { %385 = vmatpush1.bf16.msra.mxu0 %v1068_v3 }
  0x1e   : > { %386 = vmatprep.subr.bf16.mxu0 %v1168_v1 }
  0x21   : > { %387 = vmatpush1.bf16.msra.mxu0 %v1069_v4 }
  0x22   : > { %388 = vmatprep.subr.bf16.mxu0 %v1168_v1 }
  0x25   : > { %389 = vmatpush1.bf16.msra.mxu0 %v1070_v6  ;;  %v1090_v6 = vld [vmem:[%s1464_s3 + $0x30] sm:$0xff]  }
  0x26   : > { %390 = vmatprep.subr.bf16.mxu0 %v1168_v1 }
  0x29   : > { %391 = vmatpush1.bf16.msra.mxu0 %v1071_v7 }
  0x2a   : > { %392 = vmatprep.subr.bf16.mxu0 %v1168_v1 }
  0x2d   : > { %393 = vmatpush1.bf16.msra.mxu0 %v1072_v8 }
  0x2e   : > { %394 = vmatprep.subr.bf16.mxu0 %v1168_v1 }
  0x31   : > { %395 = vmatpush1.bf16.msra.mxu0 %v1073_v9 }
  0x32   : > { %404 = vmatprep.subr.bf16.mxu0 %v1168_v1 }
  0x35   : > { %405 = vmatpush2.bf16.msra.mxu0 %v1074_v10 }
  0x36   : > { %406 = vmatprep.subr.bf16.mxu0 %v1168_v1 }
  0x39   : > { %407 = vmatpush2.bf16.msra.mxu0 %v1075_v11  ;;  %v1091_v11 = vld [vmem:[%s1464_s3 + $0x68] sm:$0xff]  }
  0x3a   : > { %408 = vmatprep.subr.bf16.mxu0 %v1168_v1 }
  0x3d   : > { %409 = vmatpush2.bf16.msra.mxu0 %v1076_v12  ;;  %v1092_v12 = vld [vmem:[%s1464_s3 + $0x28] sm:$0xff]  }
  0x3e   : > { %410 = vmatprep.subr.bf16.mxu0 %v1168_v1  ;;  %v1088_v1 = vld [vmem:[%s1464_s3 + $0x38] sm:$0xff]  }
  0x3f   : > { %997 = vmatpush3.bf16.msra.mxu1 %v1088_v1 }
  0x40   : > { %998 = vmatprep.subr.bf16.mxu1 %v1089_v5 }
  0x41   : > { %411 = vmatpush2.bf16.msra.mxu0 %v1077_v13 }
  0x43   : > { %999 = vmatpush3.bf16.msra.mxu1 %v1090_v6 }
  0x44   : > { %413 = vmatmul.mubr.bf16.vlgmr.msra.gmra.mxu0 %v1078_v14  ;;  %1000 = vmatprep.subr.bf16.mxu1 %v1091_v11 }
  0x45   : > { %972 = vmatprep.mubr.msk.bf16.mxu0 %vm367_vm0, %v1081_v15 }
  0x47   : > { %1001 = vmatpush3.bf16.msra.mxu1 %v1092_v12 }
  0x4c   : > { %421 = vmatmul.mubr.bf16.gmra.mxu0 %v1083_v16  ;;  %v1093_v16 = vld [vmem:[%s1464_s3 + $0x60] sm:$0xff]  }
  0x4d   : > { %973 = vmatprep.mubr.msk.bf16.mxu0 %vm367_vm0, %v1084_v17  ;;  %v1094_v17 = vld [vmem:[%s1464_s3 + $0x20] sm:$0xff]   ;;  %1002 = vmatprep.subr.bf16.mxu1 %v1093_v16 }
  0x4e   : > { %1003 = vmatpush3.bf16.msra.mxu1 %v1094_v17 }
  0x54   : > { %429 = vmatmul.mubr.bf16.gmra.mxu0 %v1086_v18 }
 0x104   : > { %v414_v20 = vpop.f32.mrf.mxu0 }
 0x105   : > { %v415_v21 = vadd.f32 %v950_v19, %v414_v20 }
 0x106   : > { %v416_v22 = vpop.f32.mrf.mxu0 }
 0x107   : > { %445 = vst.msk [vmem:[#allocation2] sm:$0xff] %vm444_vm1, %v415_v21  ;;  %v1095_v21 = vld [vmem:[%s1464_s3 + $0x58] sm:$0xff]  }
 0x108   : > { %v417_v23 = vpop.f32.mrf.mxu0  ;;  %v1096_v22 = vld [vmem:[%s1464_s3 + $0x18] sm:$0xff]   ;;  %1004 = vmatprep.subr.bf16.mxu1 %v1095_v21 }
 0x109   : > { %v418_v24 = vadd.f32 %v950_v19, %v417_v23  ;;  %1005 = vmatpush3.bf16.msra.mxu1 %v1096_v22 }
 0x10a   : > { %v419_v25 = vpop.f32.mrf.mxu0 }
 0x10b   : > { %446 = vst.msk [vmem:[#allocation2 + $0x8] sm:$0xff] %vm444_vm1, %v418_v24 }
 0x10c   : > { %v422_v26 = vpop.f32.mrf.mxu0 }
 0x10d   : > { %v423_v27 = vadd.f32 %v950_v19, %v422_v26  ;;  %v1097_v26 = vld [vmem:[%s1464_s3 + $0x50] sm:$0xff]  }
 0x10e   : > { %v424_v28 = vpop.f32.mrf.mxu0  ;;  %v464_v29 = vld [vmem:[#allocation2 + $0x1] ss:$2 sm:$0x3]  ;;  %v453_v30 = vld [vmem:[#allocation2] ss:$2 sm:$0x3]  ;;  %1006 = vmatprep.subr.bf16.mxu1 %v1097_v26 }
 0x10f   : > { %447 = vst.msk [vmem:[#allocation2 + $0x10] sm:$0xff] %vm444_vm1, %v423_v27  ;;  %466 = vrot.lane.b32.xlu0 %v464_v29, %s1169_s30  ;;  %v481_v34 = vld [vmem:[#allocation2 + $0x2] ss:$2 sm:$0x3]  ;;  %v1098_v27 = vld [vmem:[%s1464_s3 + $0x10] sm:$0xff]   ;;  %v1099_v29 = vld [vmem:[%s1464_s3 + $0x48] sm:$0xff]  }
 0x110   : > { %v425_v31 = vpop.f32.mrf.mxu0  ;;  %455 = vst.msk [vmem:[#allocation3] sm:$0x3] %vm454_vm2, %v453_v30  ;;  %v498_v37 = vld [vmem:[#allocation2 + $0x3] ss:$2 sm:$0x3]  ;;  %1007 = vmatpush3.bf16.msra.mxu1 %v1098_v27 }
 0x111   : > { %v426_v32 = vadd.f32 %v950_v19, %v425_v31  ;;  %v230_v28 = vld [vmem:[%s1272_s17 + $0x30] sm:$0x11]  ;;  %1008 = vmatprep.subr.bf16.mxu1 %v1099_v29 }
 0x112   : > { %v427_v33 = vpop.f32.mrf.mxu0  ;;  %v515_v44 = vld [vmem:[#allocation2 + $0x7] ss:$2 sm:$0x3]  ;;  %v532_v48 = vld [vmem:[#allocation2 + $0x8] ss:$2 sm:$0x3]  ;;  %v958_v30 = vcombine.high %v230_v28, %v230_v28  ;;  %v957_v31 = vcombine.low %v230_v28, %v230_v28 }
 0x113   : > { %448 = vst.msk [vmem:[#allocation2 + $0x18] sm:$0xff] %vm444_vm1, %v426_v32  ;;  %483 = vrot.lane.b32.xlu0 %v481_v34, %s1170_s6  ;;  %v549_v51 = vld [vmem:[#allocation2 + $0x9] ss:$2 sm:$0x3] }
 0x114   : > { %v430_v35 = vpop.f32.mrf.mxu0  ;;  %v566_v54 = vld [vmem:[#allocation2 + $0xa] ss:$2 sm:$0x3]  ;;  %974 = vmatprep.mubr.msk.bf16.mxu0 %vm367_vm0, %v958_v30  ;;  %vm563_vm0 = vcmask 913154  }
 0x115   : > { %v431_v36 = vadd.f32 %v950_v19, %v430_v35  ;;  %v1100_v35 = vld [vmem:[%s1464_s3 + $0x8] sm:$0xff]   ;;  %437 = vmatmul.mubr.bf16.gmra.mxu0 %v957_v31 }
 0x116   : > { %v590_v38 = vld [vmem:[#allocation2 + $0xf] ss:$2 sm:$0x3]  ;;  %v489_v39 = vld [vmem:[#allocation2 + $0x10] ss:$2 sm:$0x3]  ;;  %v432_v40 = vpop.f32.mrf.mxu0  ;;  %1009 = vmatpush3.bf16.msra.mxu1 %v1100_v35 }
 0x117   : > { %449 = vst.msk [vmem:[#allocation2 + $0x20] sm:$0xff] %vm444_vm1, %v431_v36  ;;  %592 = vrot.lane.b32.xlu1 %v590_v38, %s1169_s30  ;;  %500 = vrot.lane.b32.xlu0 %v498_v37, %s1171_s7  ;;  %v491_v42 = vrot.slane %v489_v39, 6  ;;  %v506_v45 = vld [vmem:[#allocation2 + $0x11] ss:$2 sm:$0x3]  ;;  %v1103_v36 = vld [vmem:[%s1464_s3 + $0x40] sm:$0xff]  }
 0x118   : > { %v433_v41 = vpop.f32.mrf.mxu0  ;;  %v508_v47 = vrot.slane %v506_v45, 6  ;;  %v523_v49 = vld [vmem:[#allocation2 + $0x15] ss:$2 sm:$0x3]  ;;  %v1104_v39 = vld [vmem:[%s1464_s3] sm:$0xff]   ;;  %1010 = vmatprep.subr.bf16.mxu1 %v1103_v36 }
 0x119   : > { %v434_v43 = vadd.f32 %v950_v19, %v433_v41  ;;  %v525_v50 = vrot.slane %v523_v49, 6  ;;  %v582_v56 = vld [vmem:[#allocation2 + $0xe] ss:$2 sm:$0x3] }
 0x11a   : > { %v435_v46 = vpop.f32.mrf.mxu0  ;;  %v597_v52 = vld [vmem:[#allocation2 + $0x1d] ss:$2 sm:$0x3]  ;;  %v540_v55 = vld [vmem:[#allocation2 + $0x16] ss:$2 sm:$0x3]  ;;  %1011 = vmatpush3.bf16.msra.mxu1 %v1104_v39 }
 0x11b   : > { %492 = vrot.lane.b32.xlu1 %v491_v42, %s1170_s6  ;;  %517 = vrot.lane.b32.xlu0 %v515_v44, %s1172_s8  ;;  %450 = vst.msk [vmem:[#allocation2 + $0x28] sm:$0xff] %vm444_vm1, %v434_v43  ;;  %v599_v53 = vrot.slane %v597_v52, 6  ;;  %v585_v57 = vld [vmem:[#allocation2 + $0x1c] ss:$2 sm:$0x3]  ;;  %v542_v61 = vrot.slane %v540_v55, 6 }
 0x11c   : > { %583 = vst.msk [vmem:[#allocation3 + $0x4] sm:$0x3] %vm454_vm2, %v582_v56  ;;  %v457_v58 = vld [vmem:[#allocation2 + $0xe] ss:$2 sm:$0x3]  ;;  %v587_v59 = vrot.slane %v585_v57, 6 }
 0x11d   : > { %v459_v60 = vrot.slane %v457_v58, 6  ;;  %v604_v62 = vld [vmem:[#allocation2 + $0x10] ss:$2 sm:$0x3]  ;;  %vm580_vm1 = vcmask 1044354   ;;  %vm869_vm2 = vcmask 257024  }
 0x11e   : > { %v557_v63 = vld [vmem:[#allocation2 + $0x17] ss:$2 sm:$0x3]  ;;  %589 = vst.msk [vmem:[#allocation3 + $0x4] sm:$0xc] %vm461_vm3, %v587_v59 }
 0x11f   : > { %509 = vrot.lane.b32.xlu1 %v508_v47, %s1171_s7  ;;  %534 = vrot.lane.b32.xlu0 %v532_v48, %s1173_s9  ;;  %462 = vst.msk [vmem:[#allocation3] sm:$0xc] %vm461_vm3, %v459_v60  ;;  %v559_v2 = vrot.slane %v557_v63, 6  ;;  %v618_v3 = vld [vmem:[#allocation2 + $0x11] ss:$2 sm:$0x3] }
 0x120   : > { %v574_v4 = vld [vmem:[#allocation2 + $0x18] ss:$2 sm:$0x3]  ;;  %v632_v7 = vld [vmem:[#allocation2 + $0x15] ss:$2 sm:$0x3] }
 0x121   : > { %v576_v8 = vrot.slane %v574_v4, 6  ;;  %v611_v9 = vld [vmem:[#allocation2 + $0x1e] ss:$2 sm:$0x3] }
 0x122   : > { %v472_v10 = vld [vmem:[#allocation2 + $0xf] ss:$2 sm:$0x3]  ;;  %v613_v13 = vrot.slane %v611_v9, 6 }
 0x123   : > { %526 = vrot.lane.b32.xlu1 %v525_v50, %s1172_s8  ;;  %551 = vrot.lane.b32.xlu0 %v549_v51, %s1174_s10  ;;  %v474_v14 = vrot.slane %v472_v10, 6  ;;  %v625_v15 = vld [vmem:[#allocation2 + $0x1f] ss:$2 sm:$0x3] }
 0x124   : > { %v627_v18 = vrot.slane %v625_v15, 6  ;;  %v646_v19 = vld [vmem:[#allocation2 + $0x16] ss:$2 sm:$0x3] }
 0x125   : > { %v639_v20 = vld [vmem:[#allocation2 + $0x23] ss:$2 sm:$0x3]  ;;  %v660_v24 = vld [vmem:[#allocation2 + $0x17] ss:$2 sm:$0x3] }
 0x126   : > { %v641_v23 = vrot.slane %v639_v20, 6  ;;  %v653_v25 = vld [vmem:[#allocation2 + $0x24] ss:$2 sm:$0x3] }
 0x127   : > { %600 = vrot.lane.b32.xlu1 %v599_v53, %s1169_s30  ;;  %568 = vrot.lane.b32.xlu0 %v566_v54, %s1175_s11  ;;  %v655_v32 = vrot.slane %v653_v25, 6  ;;  %v674_v33 = vld [vmem:[#allocation2 + $0x18] ss:$2 sm:$0x3] }
 0x128   : > { %v667_v34 = vld [vmem:[#allocation2 + $0x25] ss:$2 sm:$0x3]  ;;  %v681_v38 = vld [vmem:[#allocation2 + $0x26] ss:$2 sm:$0x3] }
 0x129   : > { %v669_v37 = vrot.slane %v667_v34, 6  ;;  %v683_v40 = vrot.slane %v681_v38, 6 }
 0x12b   : > { %543 = vrot.lane.b32.xlu1 %v542_v61, %s1173_s9  ;;  %606 = vrot.lane.b32.xlu0 %v604_v62, %s1170_s6 }
 0x12f   : > { %560 = vrot.lane.b32.xlu1 %v559_v2, %s1174_s10  ;;  %620 = vrot.lane.b32.xlu0 %v618_v3, %s1171_s7 }
 0x133   : > { %577 = vrot.lane.b32.xlu1 %v576_v8, %s1175_s11  ;;  %634 = vrot.lane.b32.xlu0 %v632_v7, %s1172_s8 }
 0x137   : > { %614 = vrot.lane.b32.xlu1 %v613_v13, %s1170_s6  ;;  %475 = vrot.lane.b32.xlu0 %v474_v14, %s1169_s30  ;;  %v975_v14 = vld [vmem:[%s1465_s4] ss:$0 sm:$0xff]  ;;  %s993_s30 = sshll.u32 %s1228_s22, 6  ;;  %s1176_s22 = smov [#allocation4]  }
 0x138   : > { %s1426_s25 = scalar_lea.hbm %s1466_s5, %s993_s30  ;;  %s1110_s17 = sshll.u32 %s1176_s22, 4  ;;  %s1111_s17 = int_to_ptr.vmem [resolvable:$false] %s1110_s17 }
 0x13b   : > { %628 = vrot.lane.b32.xlu1 %v627_v18, %s1171_s7  ;;  %648 = vrot.lane.b32.xlu0 %v646_v19, %s1173_s9 }
 0x13f   : > { %642 = vrot.lane.b32.xlu1 %v641_v23, %s1172_s8  ;;  %662 = vrot.lane.b32.xlu0 %v660_v24, %s1174_s10  ;;  %s1112_s8 = scalar_lea.vmem %s1111_s17, 128 }
 0x143   : > { %656 = vrot.lane.b32.xlu1 %v655_v32, %s1173_s9  ;;  %676 = vrot.lane.b32.xlu0 %v674_v33, %s1175_s11  ;;  %s215_s9 = sand.u32 1, %s1158_s19  }
 0x144   : > { %s872_s26 = scalar_lea.sflag [#allocation5], %s215_s9 }
 0x147   : > { %670 = vrot.lane.b32.xlu1 %v669_v37, %s1174_s10  ;;  %s948_s10 = sshll.u32 %s215_s9, 2 }
 0x148   : > { %s217_s6 = scalar_lea.vmem [#allocation4], %s948_s10 }
 0x149   : > { %s885_s16 = sshll.u32 %s217_s6, 4  ;;  %s886_s16 = int_to_ptr.vmem [resolvable:$true] %s885_s16 }
 0x14a   : > { %s1106_s12 = scalar_lea.vmem %s886_s16, 64  ;;  %p1113_p0 = scmp.lt.s32.totalorder %s886_s16, %s1111_s17 }
 0x14b   : > { %684 = vrot.lane.b32.xlu1 %v683_v40, %s1175_s11  ;;  %p1107_p11 = scmp.ne.s32.totalorder %s886_s16, %s1106_s12  ;;  %p1114_p1 = scmp.lt.s32.totalorder %s1112_s8, %s1106_s12 }
 0x14d   : > { %p1108_p12 = pnand %p1107_p11, %p1245_p5  ;;  %p1115_p2 = por %p1114_p1, %p1113_p0 }
 0x14f   : > { %p1109_p13 = pneg %p1108_p12 }
 0x151   : > { %p1116_p3 = pnand %p1115_p2, %p1109_p13 }
 0x181   : > { %v467_v41 = vpop.permute.xlu0 %466 }
 0x182   : > { %470 = vst.msk [vmem:[#allocation3] sm:$0x3] %vm469_vm4, %v467_v41 }
 0x185   : > { %v484_v42 = vpop.permute.xlu0 %483 }
 0x186   : > { %487 = vst.msk [vmem:[#allocation3] sm:$0x3] %vm486_vm5, %v484_v42 }
 0x189   : > { %v593_v43 = vpop.permute.xlu1 %592  ;;  %v501_v44 = vpop.permute.xlu0 %500 }
 0x18a   : > { %595 = vst.msk [vmem:[#allocation3 + $0x4] sm:$0x3] %vm469_vm4, %v593_v43 }
 0x18b   : > { %504 = vst.msk [vmem:[#allocation3] sm:$0x3] %vm503_vm6, %v501_v44 }
 0x18d   : > { %v493_v45 = vpop.permute.xlu1 %492  ;;  %v518_v46 = vpop.permute.xlu0 %517 }
 0x18e   : > { %521 = vst.msk [vmem:[#allocation3] sm:$0x3] %vm520_vm7, %v518_v46 }
 0x191   : > { %v510_v47 = vpop.permute.xlu1 %509  ;;  %v535_v48 = vpop.permute.xlu0 %534 }
 0x192   : > { %538 = vst.msk [vmem:[#allocation3] sm:$0x3] %vm537_vm8, %v535_v48 }
 0x195   : > { %v527_v49 = vpop.permute.xlu1 %526  ;;  %v552_v50 = vpop.permute.xlu0 %551 }
 0x196   : > { %555 = vst.msk [vmem:[#allocation3] sm:$0x3] %vm554_vm9, %v552_v50 }
 0x199   : > { %v601_v51 = vpop.permute.xlu1 %600  ;;  %v569_v52 = vpop.permute.xlu0 %568 }
 0x19a   : > { %603 = vst.msk [vmem:[#allocation3 + $0x4] sm:$0xc] %vm478_vm10, %v601_v51 }
 0x19b   : > { %572 = vst.msk [vmem:[#allocation3] sm:$0x3] %vm571_vm11, %v569_v52 }
 0x19d   : > { %v544_v53 = vpop.permute.xlu1 %543  ;;  %v607_v54 = vpop.permute.xlu0 %606 }
 0x19e   : > { %609 = vst.msk [vmem:[#allocation3 + $0x4] sm:$0x3] %vm486_vm5, %v607_v54 }
 0x1a1   : > { %v561_v55 = vpop.permute.xlu1 %560  ;;  %v621_v56 = vpop.permute.xlu0 %620 }
 0x1a2   : > { %623 = vst.msk [vmem:[#allocation3 + $0x4] sm:$0x3] %vm503_vm6, %v621_v56 }
 0x1a5   : > { %v578_v57 = vpop.permute.xlu1 %577  ;;  %v635_v58 = vpop.permute.xlu0 %634 }
 0x1a6   : > { %637 = vst.msk [vmem:[#allocation3 + $0x4] sm:$0x3] %vm520_vm7, %v635_v58 }
 0x1a9   : > { %v615_v59 = vpop.permute.xlu1 %614  ;;  %v476_v60 = vpop.permute.xlu0 %475 }
 0x1aa   : > { %617 = vst.msk [vmem:[#allocation3 + $0x4] sm:$0xc] %vm495_vm12, %v615_v59 }
 0x1ab   : > { %479 = vst.msk [vmem:[#allocation3] sm:$0xc] %vm478_vm10, %v476_v60 }
 0x1ac   : > { %496 = vst.msk [vmem:[#allocation3] sm:$0xc] %vm495_vm12, %v493_v45 }
 0x1ad   : > { %513 = vst.msk [vmem:[#allocation3] sm:$0xc] %vm512_vm13, %v510_v47  ;;  %v629_v61 = vpop.permute.xlu1 %628  ;;  %v649_v62 = vpop.permute.xlu0 %648 }
 0x1ae   : > { %530 = vst.msk [vmem:[#allocation3] sm:$0xc] %vm529_vm14, %v527_v49 }
 0x1af   : > { %631 = vst.msk [vmem:[#allocation3 + $0x4] sm:$0xc] %vm512_vm13, %v629_v61 }
 0x1b0   : > { %651 = vst.msk [vmem:[#allocation3 + $0x4] sm:$0x3] %vm537_vm8, %v649_v62 }
 0x1b1   : > { %547 = vst.msk [vmem:[#allocation3] sm:$0xc] %vm546_vm15, %v544_v53  ;;  %v643_v63 = vpop.permute.xlu1 %642  ;;  %v663_v0 = vpop.permute.xlu0 %662 }
 0x1b2   : > { %564 = vst.msk [vmem:[#allocation3] sm:$0xc] %vm563_vm0, %v561_v55 }
 0x1b3   : > { %581 = vst.msk [vmem:[#allocation3] sm:$0xc] %vm580_vm1, %v578_v57 }
 0x1b4   : > { %645 = vst.msk [vmem:[#allocation3 + $0x4] sm:$0xc] %vm529_vm14, %v643_v63 }
 0x1b5   : > { %665 = vst.msk [vmem:[#allocation3 + $0x4] sm:$0x3] %vm554_vm9, %v663_v0  ;;  %v657_v1 = vpop.permute.xlu1 %656  ;;  %v677_v2 = vpop.permute.xlu0 %676 }
 0x1b6   : > { %659 = vst.msk [vmem:[#allocation3 + $0x4] sm:$0xc] %vm546_vm15, %v657_v1 }
 0x1b7   : > { %679 = vst.msk [vmem:[#allocation3 + $0x4] sm:$0x3] %vm571_vm11, %v677_v2 }
 0x1b9   : > { %v671_v3 = vpop.permute.xlu1 %670 }
 0x1ba   : > { %673 = vst.msk [vmem:[#allocation3 + $0x4] sm:$0xc] %vm563_vm0, %v671_v3 }
 0x1bd   : > { %v685_v4 = vpop.permute.xlu1 %684 }
 0x1be   : > { %687 = vst.msk [vmem:[#allocation3 + $0x4] sm:$0xc] %vm580_vm1, %v685_v4 }
 0x1c5   : > { %v688_v5 = vld [vmem:[#allocation3] sm:$0xff] }
 0x1c6   : > { %v690_v6 = vcombine.high %v688_v5, %v688_v5  ;;  %v692_v8 = vpack.c.bf16 %v688_v5, %v688_v5 }
 0x1c8   : > { %v693_v7 = vpack.c.bf16 %v690_v6, %v690_v6 }
 0x1ca   : > { %861 = vmatprep.mubr.bf16.mxu1 %v693_v7 }
 0x1cb   : > { %862 = vmatmul.mubr.bf16.vlgmr.msra.gmra.mxu1 %v692_v8 }
 0x1d5   : > { %v438_v9 = vpop.f32.mrf.mxu0 }
 0x1d7   : > { %v440_v10 = vpop.f32.mrf.mxu0 }
 0x1d9   : > { %v441_v11 = vpop.f32.mrf.mxu0 }
 0x1db   : > { %v442_v12 = vpop.f32.mrf.mxu0 }
 0x28b   : > { %v1012_v13 = vpop.f32.mrf.mxu1 }
 0x28d   : > { %v1013_v15 = vpop.f32.mrf.mxu1 }
 0x28e   : > { %v1014_v16 = vadd.f32 %v1013_v15, %v1012_v13 }
 0x28f   : > { %v1015_v17 = vpop.f32.mrf.mxu1 }
 0x290   : > { %v864_v18 = vadd.f32 %v1014_v16, %v975_v14 }
 0x291   : > { %v1016_v19 = vpop.f32.mrf.mxu1 }
 0x292   : > { %870 = vst.msk [vmem:[%s217_s6] sm:$0xf] %vm869_vm2, %v864_v18 }
 0x293   : > { %1119 = shalt.err (!%p1116_p3)
}
 0x294   : > { %s1120_s13 = scalar_lea.hbm %s1426_s25, 64  ;;  %s1124_s10 = scalar_lea.hbm %s1466_s5, 128 }
 0x295   : > { %p1121_p4 = scmp.ne.s32.totalorder %s1426_s25, %s1120_s13  ;;  %p1125_p9 = scmp.lt.s32.totalorder %s1426_s25, %s1466_s5 }
 0x296   : > { %p1126_p10 = scmp.lt.s32.totalorder %s1124_s10, %s1120_s13 }
 0x297   : > { %p1122_p7 = pnand %p1121_p4, %p1245_p5 }
 0x298   : > { %p1127_p11 = por %p1126_p10, %p1125_p9 }
 0x299   : > { %p1123_p8 = pneg %p1122_p7 }
 0x29b   : > { %p1128_p12 = pnand %p1127_p11, %p1123_p8 }
 0x29d   : > { %1131 = shalt.err (!%p1128_p12)
}
 0x29e   : > { %1019 = dma.vmem_to_hbm [thread:$0]  (%p1245_p5), %s886_s16, 64, %s1426_s25, %s872_s26  }
 0x29f PF: > { %p1025_p13 = scmp.ge.s32.totalorder %s1166_s21, 2  ;;  %s897_s30 = sand.u32 1, %s1154_s18  }
 0x2a0   : > { %s898_s6 = scalar_lea.sflag [#allocation5], %s897_s30 }
 0x2a1   : > { %p1022_p0 = pnand %p1025_p13, %p1249_p6 }
 0x2a3   : > { %p1023_p1 = pneg %p1022_p0 }
 0x2a5   : > { %1149 = dma.done.wait (%p1023_p1), %s898_s6, 64  }
 0x2a6   : > { %1151 = vsyncadd (%p1023_p1), %s898_s6, 4294967232  ;;  %p15_p2 = scmp.ge.s32.totalorder %s1232_s24, 4   ;;  %s1469_s18 = smov %s1158_s19 }
 0x2a7   : > { %s1470_s19 = smov %s1162_s20  ;;  %s1471_s20 = smov %s1243_s27 }
 0x2a8   : > { %s1472_s21 = smov %s1232_s24  ;;  %17 = sbr.rel (!%p15_p2) target bundleno = 3 (0x3), region = 98 }
 0x2ad   :  { %903 = vsyncpa [#allocation5], 1 }
 0x2ae   :  { %905 = vsyncpa [#allocation5 + $0x1], 1 }

</bundles_post_ra>
